<compile_context>
chip_gen: v7x
topology: tpu7x:2x2x1
jax: 0.10.0
libtpu: 0.0.40
codegen_flags: <defaults>
</compile_context>

<pallas_src>
import functools
import math

import jax
import jax.numpy as jnp
from jax.experimental import pallas as pl
from jax.experimental.pallas import tpu as pltpu

VTH = 0.2
TAU = 0.25

_SPIKE_DTYPE = jnp.bfloat16   # spikes are exactly 0.0 / 1.0 -> bf16 is lossless
_SUBLANES = 16                # feature view: dense f32 loads AND packed bf16 stores
_LANE_CHUNK = 512             # lanes per inner recurrence chunk (bounds vreg pressure)
_LANE_TILE_CAP = 16 * 1024    # max lanes per grid block
_UNROLL_T_MAX = 32            # fully unroll the time loop only when it is short


def _round_up(a, b):
    return -(-a // b) * b


@functools.lru_cache(maxsize=None)
def _vmem_budget():
    """(double-buffered block budget, vmem_limit_bytes), gated by generation."""
    try:
        cap = int(pltpu.get_tpu_info().vmem_capacity_bytes)
    except Exception:
        cap = 64 * 1024 * 1024          # assume the smallest per-core VMEM (v7x)
    budget = max(8 * 1024 * 1024, min(cap // 4, 48 * 1024 * 1024))
    limit = max(2 * budget, min(cap // 2, 96 * 1024 * 1024))
    return budget, limit


def _pick_tiles(M, T, in_itemsize, out_itemsize, budget_bytes):
    """Choose (lane tile L, n_lane_tiles, time block Tb, n_time_blocks)."""
    S = _SUBLANES
    G = max(1, -(-M // (S * 128)))                      # 128-lane feature groups
    # double-buffered in+out bytes per lane-group per time step
    group_step_bytes = 2 * S * 128 * (in_itemsize + out_itemsize)

    max_groups_full_t = budget_bytes // (T * group_step_bytes)
    if max_groups_full_t >= 1:
        # Whole time axis resident in the block (the small-T conv case).
        tb, n_t = T, 1
        g_max = min(max_groups_full_t, _LANE_TILE_CAP // 128)
    else:
        # Large T: block the time axis; (u, spike) are carried in VMEM scratch.
        tb = min(T, max(1, budget_bytes // group_step_bytes))
        n_t = -(-T // tb)
        g_max = 1

    n_tiles = -(-G // g_max)
    if G >= 4:
        n_tiles = max(n_tiles, 4)       # >= 2 tiles per v7x TensorCore
    if n_tiles % 2 and n_tiles < G:
        n_tiles += 1                    # even split across the 2 TensorCores
    n_tiles = min(n_tiles, G)
    g = -(-G // n_tiles)
    n_tiles = -(-G // g)                # drop tiles made redundant by rounding
    if n_tiles % 2 and n_tiles < G and (n_tiles + 1) * g - G <= max(1, G // 8):
        n_tiles += 1                    # re-even only if the padding stays small
    return 128 * g, n_tiles, tb, n_t


def _lif_kernel(x_ref, o_ref, u_ref, s_ref):
    """x_ref: (Tb, 16, L) input block; o_ref: (Tb, 16, L) bf16 spikes.

    u_ref / s_ref: (16, L) f32 carries (membrane potential, previous spike),
    persistent across the trailing "arbitrary" time-block grid axis.
    """
    Tb, S, L = x_ref.shape

    @pl.when(pl.program_id(1) == 0)
    def _():
        u_ref[...] = jnp.zeros_like(u_ref)
        s_ref[...] = jnp.zeros_like(s_ref)

    # Lane chunking keeps the live carry to a handful of vregs per iteration.
    if L % _LANE_CHUNK == 0:
        chunk = _LANE_CHUNK
    elif L % 256 == 0:
        chunk = 256
    else:
        chunk = 128
    n_chunks = L // chunk

    def run_chunk(c0):
        u = u_ref[:, pl.ds(c0, chunk)]
        spk = s_ref[:, pl.ds(c0, chunk)] > 0.5

        def step(t, u, spk):
            x_t = x_ref[t, :, pl.ds(c0, chunk)].astype(jnp.float32)
            # u_t = tau*u*(1 - o_prev) + x_t with o_prev in {0, 1}; identical to
            # selecting x_t when the previous step spiked (for finite u).
            u = jnp.where(spk, x_t, TAU * u + x_t)
            spk = u > VTH
            # dense, packed full-vreg store of this time step (bf16)
            o_ref[t, :, pl.ds(c0, chunk)] = spk.astype(o_ref.dtype)
            return u, spk

        if Tb <= _UNROLL_T_MAX:
            for t in range(Tb):                       # static -> fully unrolled
                u, spk = step(t, u, spk)
        else:
            u, spk = jax.lax.fori_loop(0, Tb, lambda t, c: step(t, *c), (u, spk))

        u_ref[:, pl.ds(c0, chunk)] = u
        s_ref[:, pl.ds(c0, chunk)] = spk.astype(jnp.float32)

    if n_chunks == 1:
        run_chunk(0)
    else:
        def chunk_body(c, carry):
            run_chunk(pl.multiple_of(c * chunk, chunk))
            return carry
        jax.lax.fori_loop(0, n_chunks, chunk_body, 0)


@jax.jit
def lif_spike(x):
    """x: (..., T) float array; returns float32 spikes of the same shape."""
    orig_shape = x.shape
    T = orig_shape[-1]
    M = int(math.prod(orig_shape[:-1])) if len(orig_shape) > 1 else 1

    budget, vmem_limit = _vmem_budget()
    in_sz = jnp.dtype(x.dtype).itemsize
    out_sz = jnp.dtype(_SPIKE_DTYPE).itemsize
    L, n_tiles, Tb, n_t = _pick_tiles(M, T, in_sz, out_sz, budget)
    Mp = _SUBLANES * n_tiles * L
    Tp = n_t * Tb

    x2 = jnp.reshape(x, (M, T))                       # free row-major view
    if Mp > M or Tp > T:
        x2 = jnp.pad(x2, ((0, Mp - M), (0, Tp - T)))  # fused with the transpose
    # Single transposing copy to time-major, in the input's native dtype;
    # the (Tp, 16, Mp//16) view keeps every per-step slab sublane/lane-dense.
    x3 = jnp.reshape(x2.T, (Tp, _SUBLANES, Mp // _SUBLANES))

    out3 = pl.pallas_call(
        _lif_kernel,
        out_shape=jax.ShapeDtypeStruct((Tp, _SUBLANES, Mp // _SUBLANES), _SPIKE_DTYPE),
        grid_spec=pltpu.PrefetchScalarGridSpec(
            num_scalar_prefetch=0,
            grid=(n_tiles, n_t),
            in_specs=[pl.BlockSpec((Tb, _SUBLANES, L), lambda i, j: (j, 0, i))],
            out_specs=pl.BlockSpec((Tb, _SUBLANES, L), lambda i, j: (j, 0, i)),
            scratch_shapes=[pltpu.VMEM((_SUBLANES, L), jnp.float32),
                            pltpu.VMEM((_SUBLANES, L), jnp.float32)],
        ),
        compiler_params=pltpu.CompilerParams(
            dimension_semantics=("parallel", "arbitrary"),
            vmem_limit_bytes=vmem_limit,
        ),
    )(x3)

    # Un-transpose back to (..., T); the float32 cast rides this existing copy,
    # so bf16 spikes are the only thing the kernel ever writes to HBM.
    out2 = jnp.reshape(out3, (Tp, Mp))[:T, :M]
    return jnp.reshape(out2.T.astype(jnp.float32), orig_shape)


def lif_spike_ref(x):
    """Pure-JAX reference mirroring the PyTorch loop."""
    T = x.shape[-1]
    u = jnp.zeros(x.shape[:-1], jnp.float32)
    o_prev = jnp.zeros(x.shape[:-1], jnp.float32)
    outs = []
    for t in range(T):
        u = TAU * u * (1.0 - o_prev) + x[..., t].astype(jnp.float32)
        o_prev = (u > VTH).astype(jnp.float32)
        outs.append(o_prev)
    return jnp.stack(outs, axis=-1)


# TODO(synk): SpikeAct.backward (surrogate-gradient box window) is training-only
# custom autograd; only the forward pass is implemented here.

if __name__ == "__main__":
    # Shapes consistent with the module's use on conv feature maps (NCHW + time):
    # batch=2, channels=4, spatial=16x16, nsteps=8.
    key = jax.random.PRNGKey(0)
    x = jax.random.normal(key, (2, 4, 16, 16, 8), dtype=jnp.float32) * 0.5

    out = jax.block_until_ready(lif_spike(x))
    ref = lif_spike_ref(x)

    assert out.shape == x.shape
    assert out.dtype == jnp.float32
    assert jnp.allclose(out, ref), "mismatch vs reference"

    print("KERNEL_OK")
</pallas_src>

<mosaic_0001>
module attributes {stable_mosaic.version = 11 : i64} {
  func.func @_lif_kernel(%arg0: i32, %arg1: i32, %arg2: memref<8x16x128xf32, #tpu.memory_space<vmem>>, %arg3: memref<8x16x128xbf16, #tpu.memory_space<vmem>>, %arg4: memref<16x128xf32, #tpu.memory_space<vmem>>, %arg5: memref<16x128xf32, #tpu.memory_space<vmem>>) attributes {dimension_semantics = [#tpu.dimension_semantics<parallel>, #tpu.dimension_semantics<arbitrary>], iteration_bounds = array<i64: 1, 1>, scalar_prefetch = 0 : i64, scratch_operands = 2 : i64, tpu.core_type = #tpu.core_type<tc>, window_params = [{transform_indices = @transform_0, window_bounds = array<i64: 8, 16, 128>}, {transform_indices = @transform_1, window_bounds = array<i64: 8, 16, 128>}]} {
    %c0_i32 = arith.constant 0 : i32
    %0 = arith.cmpi eq, %arg1, %c0_i32 : i32
    %1 = arith.extui %0 : i1 to i32
    %c0_i32_0 = arith.constant 0 : i32
    %2 = arith.cmpi ne, %1, %c0_i32_0 : i32
    scf.if %2 {
      %cst_65 = arith.constant 0.000000e+00 : f32
      %123 = vector.broadcast %cst_65 : f32 to vector<16x128xf32>
      %c0_66 = arith.constant 0 : index
      %c0_67 = arith.constant 0 : index
      %124 = vector.load %arg4[%c0_66, %c0_67] : memref<16x128xf32, #tpu.memory_space<vmem>>, vector<16x128xf32>
      tpu.vector_store %arg4[%c0_66, %c0_67], %123 {strides = array<i32>} : memref<16x128xf32, #tpu.memory_space<vmem>>, vector<16x128xf32>,
      %cst_68 = arith.constant 0.000000e+00 : f32
      %125 = vector.broadcast %cst_68 : f32 to vector<16x128xf32>
      %c0_69 = arith.constant 0 : index
      %c0_70 = arith.constant 0 : index
      %126 = vector.load %arg5[%c0_69, %c0_70] : memref<16x128xf32, #tpu.memory_space<vmem>>, vector<16x128xf32>
      tpu.vector_store %arg5[%c0_69, %c0_70], %125 {strides = array<i32>} : memref<16x128xf32, #tpu.memory_space<vmem>>, vector<16x128xf32>,
    } else {
    }
    %c0 = arith.constant 0 : index
    %c0_1 = arith.constant 0 : index
    %3 = vector.load %arg4[%c0, %c0_1] : memref<16x128xf32, #tpu.memory_space<vmem>>, vector<16x128xf32>
    %c0_2 = arith.constant 0 : index
    %c0_3 = arith.constant 0 : index
    %4 = vector.load %arg5[%c0_2, %c0_3] : memref<16x128xf32, #tpu.memory_space<vmem>>, vector<16x128xf32>
    %cst = arith.constant 5.000000e-01 : f32
    %5 = vector.broadcast %cst : f32 to vector<16x128xf32>
    %6 = arith.cmpf ogt, %4, %5 : vector<16x128xf32>
    %c0_4 = arith.constant 0 : index
    %c0_5 = arith.constant 0 : index
    %c0_6 = arith.constant 0 : index
    %7 = vector.load %arg2[%c0_4, %c0_5, %c0_6] : memref<8x16x128xf32, #tpu.memory_space<vmem>>, vector<1x16x128xf32>
    %8 = vector.shape_cast %7 : vector<1x16x128xf32> to vector<16x128xf32>
    %cst_7 = arith.constant 2.500000e-01 : f32
    %9 = vector.broadcast %cst_7 : f32 to vector<16x128xf32>
    %10 = arith.mulf %9, %3 : vector<16x128xf32>
    %11 = arith.addf %10, %8 : vector<16x128xf32>
    %12 = arith.select %6, %8, %11 : vector<16x128xi1>, vector<16x128xf32>
    %cst_8 = arith.constant 2.000000e-01 : f32
    %13 = vector.broadcast %cst_8 : f32 to vector<16x128xf32>
    %14 = arith.cmpf ogt, %12, %13 : vector<16x128xf32>
    %15 = arith.extui %14 : vector<16x128xi1> to vector<16x128xi32>
    %16 = arith.sitofp %15 : vector<16x128xi32> to vector<16x128xf32>
    %17 = arith.truncf %16 : vector<16x128xf32> to vector<16x128xbf16>
    %c0_9 = arith.constant 0 : index
    %c0_10 = arith.constant 0 : index
    %c0_11 = arith.constant 0 : index
    %18 = vector.load %arg3[%c0_9, %c0_10, %c0_11] : memref<8x16x128xbf16, #tpu.memory_space<vmem>>, vector<1x16x128xbf16>
    %19 = vector.shape_cast %18 : vector<1x16x128xbf16> to vector<16x128xbf16>
    %20 = vector.shape_cast %17 : vector<16x128xbf16> to vector<1x16x128xbf16>
    tpu.vector_store %arg3[%c0_9, %c0_10, %c0_11], %20 {strides = array<i32>} : memref<8x16x128xbf16, #tpu.memory_space<vmem>>, vector<1x16x128xbf16>,
    %c1 = arith.constant 1 : index
    %c0_12 = arith.constant 0 : index
    %c0_13 = arith.constant 0 : index
    %21 = vector.load %arg2[%c1, %c0_12, %c0_13] : memref<8x16x128xf32, #tpu.memory_space<vmem>>, vector<1x16x128xf32>
    %22 = vector.shape_cast %21 : vector<1x16x128xf32> to vector<16x128xf32>
    %cst_14 = arith.constant 2.500000e-01 : f32
    %23 = vector.broadcast %cst_14 : f32 to vector<16x128xf32>
    %24 = arith.mulf %23, %12 : vector<16x128xf32>
    %25 = arith.addf %24, %22 : vector<16x128xf32>
    %26 = arith.select %14, %22, %25 : vector<16x128xi1>, vector<16x128xf32>
    %cst_15 = arith.constant 2.000000e-01 : f32
    %27 = vector.broadcast %cst_15 : f32 to vector<16x128xf32>
    %28 = arith.cmpf ogt, %26, %27 : vector<16x128xf32>
    %29 = arith.extui %28 : vector<16x128xi1> to vector<16x128xi32>
    %30 = arith.sitofp %29 : vector<16x128xi32> to vector<16x128xf32>
    %31 = arith.truncf %30 : vector<16x128xf32> to vector<16x128xbf16>
    %c1_16 = arith.constant 1 : index
    %c0_17 = arith.constant 0 : index
    %c0_18 = arith.constant 0 : index
    %32 = vector.load %arg3[%c1_16, %c0_17, %c0_18] : memref<8x16x128xbf16, #tpu.memory_space<vmem>>, vector<1x16x128xbf16>
    %33 = vector.shape_cast %32 : vector<1x16x128xbf16> to vector<16x128xbf16>
    %34 = vector.shape_cast %31 : vector<16x128xbf16> to vector<1x16x128xbf16>
    tpu.vector_store %arg3[%c1_16, %c0_17, %c0_18], %34 {strides = array<i32>} : memref<8x16x128xbf16, #tpu.memory_space<vmem>>, vector<1x16x128xbf16>,
    %c2 = arith.constant 2 : index
    %c0_19 = arith.constant 0 : index
    %c0_20 = arith.constant 0 : index
    %35 = vector.load %arg2[%c2, %c0_19, %c0_20] : memref<8x16x128xf32, #tpu.memory_space<vmem>>, vector<1x16x128xf32>
    %36 = vector.shape_cast %35 : vector<1x16x128xf32> to vector<16x128xf32>
    %cst_21 = arith.constant 2.500000e-01 : f32
    %37 = vector.broadcast %cst_21 : f32 to vector<16x128xf32>
    %38 = arith.mulf %37, %26 : vector<16x128xf32>
    %39 = arith.addf %38, %36 : vector<16x128xf32>
    %40 = arith.select %28, %36, %39 : vector<16x128xi1>, vector<16x128xf32>
    %cst_22 = arith.constant 2.000000e-01 : f32
    %41 = vector.broadcast %cst_22 : f32 to vector<16x128xf32>
    %42 = arith.cmpf ogt, %40, %41 : vector<16x128xf32>
    %43 = arith.extui %42 : vector<16x128xi1> to vector<16x128xi32>
    %44 = arith.sitofp %43 : vector<16x128xi32> to vector<16x128xf32>
    %45 = arith.truncf %44 : vector<16x128xf32> to vector<16x128xbf16>
    %c2_23 = arith.constant 2 : index
    %c0_24 = arith.constant 0 : index
    %c0_25 = arith.constant 0 : index
    %46 = vector.load %arg3[%c2_23, %c0_24, %c0_25] : memref<8x16x128xbf16, #tpu.memory_space<vmem>>, vector<1x16x128xbf16>
    %47 = vector.shape_cast %46 : vector<1x16x128xbf16> to vector<16x128xbf16>
    %48 = vector.shape_cast %45 : vector<16x128xbf16> to vector<1x16x128xbf16>
    tpu.vector_store %arg3[%c2_23, %c0_24, %c0_25], %48 {strides = array<i32>} : memref<8x16x128xbf16, #tpu.memory_space<vmem>>, vector<1x16x128xbf16>,
    %c3 = arith.constant 3 : index
    %c0_26 = arith.constant 0 : index
    %c0_27 = arith.constant 0 : index
    %49 = vector.load %arg2[%c3, %c0_26, %c0_27] : memref<8x16x128xf32, #tpu.memory_space<vmem>>, vector<1x16x128xf32>
    %50 = vector.shape_cast %49 : vector<1x16x128xf32> to vector<16x128xf32>
    %cst_28 = arith.constant 2.500000e-01 : f32
    %51 = vector.broadcast %cst_28 : f32 to vector<16x128xf32>
    %52 = arith.mulf %51, %40 : vector<16x128xf32>
    %53 = arith.addf %52, %50 : vector<16x128xf32>
    %54 = arith.select %42, %50, %53 : vector<16x128xi1>, vector<16x128xf32>
    %cst_29 = arith.constant 2.000000e-01 : f32
    %55 = vector.broadcast %cst_29 : f32 to vector<16x128xf32>
    %56 = arith.cmpf ogt, %54, %55 : vector<16x128xf32>
    %57 = arith.extui %56 : vector<16x128xi1> to vector<16x128xi32>
    %58 = arith.sitofp %57 : vector<16x128xi32> to vector<16x128xf32>
    %59 = arith.truncf %58 : vector<16x128xf32> to vector<16x128xbf16>
    %c3_30 = arith.constant 3 : index
    %c0_31 = arith.constant 0 : index
    %c0_32 = arith.constant 0 : index
    %60 = vector.load %arg3[%c3_30, %c0_31, %c0_32] : memref<8x16x128xbf16, #tpu.memory_space<vmem>>, vector<1x16x128xbf16>
    %61 = vector.shape_cast %60 : vector<1x16x128xbf16> to vector<16x128xbf16>
    %62 = vector.shape_cast %59 : vector<16x128xbf16> to vector<1x16x128xbf16>
    tpu.vector_store %arg3[%c3_30, %c0_31, %c0_32], %62 {strides = array<i32>} : memref<8x16x128xbf16, #tpu.memory_space<vmem>>, vector<1x16x128xbf16>,
    %c4 = arith.constant 4 : index
    %c0_33 = arith.constant 0 : index
    %c0_34 = arith.constant 0 : index
    %63 = vector.load %arg2[%c4, %c0_33, %c0_34] : memref<8x16x128xf32, #tpu.memory_space<vmem>>, vector<1x16x128xf32>
    %64 = vector.shape_cast %63 : vector<1x16x128xf32> to vector<16x128xf32>
    %cst_35 = arith.constant 2.500000e-01 : f32
    %65 = vector.broadcast %cst_35 : f32 to vector<16x128xf32>
    %66 = arith.mulf %65, %54 : vector<16x128xf32>
    %67 = arith.addf %66, %64 : vector<16x128xf32>
    %68 = arith.select %56, %64, %67 : vector<16x128xi1>, vector<16x128xf32>
    %cst_36 = arith.constant 2.000000e-01 : f32
    %69 = vector.broadcast %cst_36 : f32 to vector<16x128xf32>
    %70 = arith.cmpf ogt, %68, %69 : vector<16x128xf32>
    %71 = arith.extui %70 : vector<16x128xi1> to vector<16x128xi32>
    %72 = arith.sitofp %71 : vector<16x128xi32> to vector<16x128xf32>
    %73 = arith.truncf %72 : vector<16x128xf32> to vector<16x128xbf16>
    %c4_37 = arith.constant 4 : index
    %c0_38 = arith.constant 0 : index
    %c0_39 = arith.constant 0 : index
    %74 = vector.load %arg3[%c4_37, %c0_38, %c0_39] : memref<8x16x128xbf16, #tpu.memory_space<vmem>>, vector<1x16x128xbf16>
    %75 = vector.shape_cast %74 : vector<1x16x128xbf16> to vector<16x128xbf16>
    %76 = vector.shape_cast %73 : vector<16x128xbf16> to vector<1x16x128xbf16>
    tpu.vector_store %arg3[%c4_37, %c0_38, %c0_39], %76 {strides = array<i32>} : memref<8x16x128xbf16, #tpu.memory_space<vmem>>, vector<1x16x128xbf16>,
    %c5 = arith.constant 5 : index
    %c0_40 = arith.constant 0 : index
    %c0_41 = arith.constant 0 : index
    %77 = vector.load %arg2[%c5, %c0_40, %c0_41] : memref<8x16x128xf32, #tpu.memory_space<vmem>>, vector<1x16x128xf32>
    %78 = vector.shape_cast %77 : vector<1x16x128xf32> to vector<16x128xf32>
    %cst_42 = arith.constant 2.500000e-01 : f32
    %79 = vector.broadcast %cst_42 : f32 to vector<16x128xf32>
    %80 = arith.mulf %79, %68 : vector<16x128xf32>
    %81 = arith.addf %80, %78 : vector<16x128xf32>
    %82 = arith.select %70, %78, %81 : vector<16x128xi1>, vector<16x128xf32>
    %cst_43 = arith.constant 2.000000e-01 : f32
    %83 = vector.broadcast %cst_43 : f32 to vector<16x128xf32>
    %84 = arith.cmpf ogt, %82, %83 : vector<16x128xf32>
    %85 = arith.extui %84 : vector<16x128xi1> to vector<16x128xi32>
    %86 = arith.sitofp %85 : vector<16x128xi32> to vector<16x128xf32>
    %87 = arith.truncf %86 : vector<16x128xf32> to vector<16x128xbf16>
    %c5_44 = arith.constant 5 : index
    %c0_45 = arith.constant 0 : index
    %c0_46 = arith.constant 0 : index
    %88 = vector.load %arg3[%c5_44, %c0_45, %c0_46] : memref<8x16x128xbf16, #tpu.memory_space<vmem>>, vector<1x16x128xbf16>
    %89 = vector.shape_cast %88 : vector<1x16x128xbf16> to vector<16x128xbf16>
    %90 = vector.shape_cast %87 : vector<16x128xbf16> to vector<1x16x128xbf16>
    tpu.vector_store %arg3[%c5_44, %c0_45, %c0_46], %90 {strides = array<i32>} : memref<8x16x128xbf16, #tpu.memory_space<vmem>>, vector<1x16x128xbf16>,
    %c6 = arith.constant 6 : index
    %c0_47 = arith.constant 0 : index
    %c0_48 = arith.constant 0 : index
    %91 = vector.load %arg2[%c6, %c0_47, %c0_48] : memref<8x16x128xf32, #tpu.memory_space<vmem>>, vector<1x16x128xf32>
    %92 = vector.shape_cast %91 : vector<1x16x128xf32> to vector<16x128xf32>
    %cst_49 = arith.constant 2.500000e-01 : f32
    %93 = vector.broadcast %cst_49 : f32 to vector<16x128xf32>
    %94 = arith.mulf %93, %82 : vector<16x128xf32>
    %95 = arith.addf %94, %92 : vector<16x128xf32>
    %96 = arith.select %84, %92, %95 : vector<16x128xi1>, vector<16x128xf32>
    %cst_50 = arith.constant 2.000000e-01 : f32
    %97 = vector.broadcast %cst_50 : f32 to vector<16x128xf32>
    %98 = arith.cmpf ogt, %96, %97 : vector<16x128xf32>
    %99 = arith.extui %98 : vector<16x128xi1> to vector<16x128xi32>
    %100 = arith.sitofp %99 : vector<16x128xi32> to vector<16x128xf32>
    %101 = arith.truncf %100 : vector<16x128xf32> to vector<16x128xbf16>
    %c6_51 = arith.constant 6 : index
    %c0_52 = arith.constant 0 : index
    %c0_53 = arith.constant 0 : index
    %102 = vector.load %arg3[%c6_51, %c0_52, %c0_53] : memref<8x16x128xbf16, #tpu.memory_space<vmem>>, vector<1x16x128xbf16>
    %103 = vector.shape_cast %102 : vector<1x16x128xbf16> to vector<16x128xbf16>
    %104 = vector.shape_cast %101 : vector<16x128xbf16> to vector<1x16x128xbf16>
    tpu.vector_store %arg3[%c6_51, %c0_52, %c0_53], %104 {strides = array<i32>} : memref<8x16x128xbf16, #tpu.memory_space<vmem>>, vector<1x16x128xbf16>,
    %c7 = arith.constant 7 : index
    %c0_54 = arith.constant 0 : index
    %c0_55 = arith.constant 0 : index
    %105 = vector.load %arg2[%c7, %c0_54, %c0_55] : memref<8x16x128xf32, #tpu.memory_space<vmem>>, vector<1x16x128xf32>
    %106 = vector.shape_cast %105 : vector<1x16x128xf32> to vector<16x128xf32>
    %cst_56 = arith.constant 2.500000e-01 : f32
    %107 = vector.broadcast %cst_56 : f32 to vector<16x128xf32>
    %108 = arith.mulf %107, %96 : vector<16x128xf32>
    %109 = arith.addf %108, %106 : vector<16x128xf32>
    %110 = arith.select %98, %106, %109 : vector<16x128xi1>, vector<16x128xf32>
    %cst_57 = arith.constant 2.000000e-01 : f32
    %111 = vector.broadcast %cst_57 : f32 to vector<16x128xf32>
    %112 = arith.cmpf ogt, %110, %111 : vector<16x128xf32>
    %113 = arith.extui %112 : vector<16x128xi1> to vector<16x128xi32>
    %114 = arith.sitofp %113 : vector<16x128xi32> to vector<16x128xf32>
    %115 = arith.truncf %114 : vector<16x128xf32> to vector<16x128xbf16>
    %c7_58 = arith.constant 7 : index
    %c0_59 = arith.constant 0 : index
    %c0_60 = arith.constant 0 : index
    %116 = vector.load %arg3[%c7_58, %c0_59, %c0_60] : memref<8x16x128xbf16, #tpu.memory_space<vmem>>, vector<1x16x128xbf16>
    %117 = vector.shape_cast %116 : vector<1x16x128xbf16> to vector<16x128xbf16>
    %118 = vector.shape_cast %115 : vector<16x128xbf16> to vector<1x16x128xbf16>
    tpu.vector_store %arg3[%c7_58, %c0_59, %c0_60], %118 {strides = array<i32>} : memref<8x16x128xbf16, #tpu.memory_space<vmem>>, vector<1x16x128xbf16>,
    %c0_61 = arith.constant 0 : index
    %c0_62 = arith.constant 0 : index
    %119 = vector.load %arg4[%c0_61, %c0_62] : memref<16x128xf32, #tpu.memory_space<vmem>>, vector<16x128xf32>
    tpu.vector_store %arg4[%c0_61, %c0_62], %110 {strides = array<i32>} : memref<16x128xf32, #tpu.memory_space<vmem>>, vector<16x128xf32>,
    %120 = arith.extui %112 : vector<16x128xi1> to vector<16x128xi32>
    %121 = arith.sitofp %120 : vector<16x128xi32> to vector<16x128xf32>
    %c0_63 = arith.constant 0 : index
    %c0_64 = arith.constant 0 : index
    %122 = vector.load %arg5[%c0_63, %c0_64] : memref<16x128xf32, #tpu.memory_space<vmem>>, vector<16x128xf32>
    tpu.vector_store %arg5[%c0_63, %c0_64], %121 {strides = array<i32>} : memref<16x128xf32, #tpu.memory_space<vmem>>, vector<16x128xf32>,
    return
  }
  func.func @transform_0(%arg0: i32, %arg1: i32) -> (i32, i32, i32) {
    %c0_i32 = arith.constant 0 : i32
    %c0_i32_0 = arith.constant 0 : i32
    return %arg1, %c0_i32, %arg0 : i32, i32, i32
  }
  func.func @transform_1(%arg0: i32, %arg1: i32) -> (i32, i32, i32) {
    %c0_i32 = arith.constant 0 : i32
    %c0_i32_0 = arith.constant 0 : i32
    return %arg1, %c0_i32, %arg0 : i32, i32, i32
  }
}

</mosaic_0001>

<bundles_post_ra>
// kernel: lif_spike.1
= control target key start
LH: loop header
LB: loop body
LE: loop exit
PB: predicated region body
PF: predicated region fallthrough
CT: control target
= control target key end

     0   :  { %v344_v5 = vmov 0.0   ;;  %s443_s0 = inlined_call_operand.vmem [shape: f32[8,16,128], index: 0, kind: input, shape index: {}]   ;;  %s444_s1 = inlined_call_operand.vmem [shape: bf16[8,16,128], index: 1, kind: output, shape index: {}]  }
   0x1   :  { %v22_v0 = vld [vmem:[%s443_s0] sm:$0xff]  ;;  %v23_v1 = vld [vmem:[%s443_s0 + $0x8] sm:$0xff]  ;;  %v240_v2 = vld [vmem:[%s443_s0 + $0x10] sm:$0xff] }
   0x2   :  { %vm30_vm0 = vcmp.gt.f32.partialorder %v22_v0, 0.2  ;;  %vm31_vm1 = vcmp.gt.f32.partialorder %v23_v1, 0.2  ;;  %v49_v3 = vmul.f32 0.25, %v22_v0  ;;  %v50_v4 = vmul.f32 0.25, %v23_v1 }
   0x3   :  { %v236_v6 = vsel %vm30_vm0, 1.0, %v344_v5  ;;  %v237_v7 = vsel %vm31_vm1, 1.0, %v344_v5  ;;  %v241_v8 = vld [vmem:[%s443_s0 + $0x18] sm:$0xff]  ;;  %v248_v14 = vld [vmem:[%s443_s0 + $0x20] sm:$0xff]  ;;  %v249_v15 = vld [vmem:[%s443_s0 + $0x28] sm:$0xff] }
   0x4   :  { %v313_v9 = vpack.c.bf16 %v237_v7, %v236_v6  ;;  %v51_v10 = vadd.f32 %v240_v2, %v49_v3  ;;  %v52_v11 = vadd.f32 %v241_v8, %v50_v4  ;;  %v256_v25 = vld [vmem:[%s443_s0 + $0x30] sm:$0xff]  ;;  %v257_v26 = vld [vmem:[%s443_s0 + $0x38] sm:$0xff]  ;;  %v264_v36 = vld [vmem:[%s443_s0 + $0x40] sm:$0xff] }
   0x5   :  { %v265_v37 = vld [vmem:[%s443_s0 + $0x48] sm:$0xff]  ;;  %v272_v47 = vld [vmem:[%s443_s0 + $0x50] sm:$0xff]  ;;  %v273_v48 = vld [vmem:[%s443_s0 + $0x58] sm:$0xff] }
   0x6   :  { %314 = vst [vmem:[%s444_s1] sm:$0xff] %v313_v9   ;;  %v53_v12 = vsel %vm30_vm0, %v240_v2, %v51_v10  ;;  %v54_v13 = vsel %vm31_vm1, %v241_v8, %v52_v11  ;;  %v280_v58 = vld [vmem:[%s443_s0 + $0x60] sm:$0xff]  ;;  %v281_v59 = vld [vmem:[%s443_s0 + $0x68] sm:$0xff]  ;;  %v288_v6 = vld [vmem:[%s443_s0 + $0x70] sm:$0xff] }
   0x7   :  { %vm55_vm2 = vcmp.gt.f32.partialorder %v53_v12, 0.2  ;;  %vm56_vm3 = vcmp.gt.f32.partialorder %v54_v13, 0.2  ;;  %v75_v16 = vmul.f32 0.25, %v53_v12  ;;  %v76_v17 = vmul.f32 0.25, %v54_v13 }
   0x8   :  { %v242_v18 = vsel %vm55_vm2, 1.0, %v344_v5  ;;  %v243_v19 = vsel %vm56_vm3, 1.0, %v344_v5  ;;  %v289_v7 = vld [vmem:[%s443_s0 + $0x78] sm:$0xff] }
   0x9   :  { %v316_v20 = vpack.c.bf16 %v243_v19, %v242_v18  ;;  %v77_v21 = vadd.f32 %v248_v14, %v75_v16  ;;  %v78_v22 = vadd.f32 %v249_v15, %v76_v17 }
   0xb   :  { %336 = vst [vmem:[%s444_s1 + $0x8] sm:$0xff] %v316_v20   ;;  %v79_v23 = vsel %vm55_vm2, %v248_v14, %v77_v21  ;;  %v80_v24 = vsel %vm56_vm3, %v249_v15, %v78_v22 }
   0xc   :  { %vm81_vm4 = vcmp.gt.f32.partialorder %v79_v23, 0.2  ;;  %vm82_vm5 = vcmp.gt.f32.partialorder %v80_v24, 0.2  ;;  %v101_v27 = vmul.f32 0.25, %v79_v23  ;;  %v102_v28 = vmul.f32 0.25, %v80_v24 }
   0xd   :  { %v250_v29 = vsel %vm81_vm4, 1.0, %v344_v5  ;;  %v251_v30 = vsel %vm82_vm5, 1.0, %v344_v5 }
   0xe   :  { %v319_v31 = vpack.c.bf16 %v251_v30, %v250_v29  ;;  %v103_v32 = vadd.f32 %v256_v25, %v101_v27  ;;  %v104_v33 = vadd.f32 %v257_v26, %v102_v28 }
  0x10   :  { %337 = vst [vmem:[%s444_s1 + $0x10] sm:$0xff] %v319_v31   ;;  %v105_v34 = vsel %vm81_vm4, %v256_v25, %v103_v32  ;;  %v106_v35 = vsel %vm82_vm5, %v257_v26, %v104_v33 }
  0x11   :  { %vm107_vm6 = vcmp.gt.f32.partialorder %v105_v34, 0.2  ;;  %vm108_vm7 = vcmp.gt.f32.partialorder %v106_v35, 0.2  ;;  %v127_v38 = vmul.f32 0.25, %v105_v34  ;;  %v128_v39 = vmul.f32 0.25, %v106_v35 }
  0x12   :  { %v258_v40 = vsel %vm107_vm6, 1.0, %v344_v5  ;;  %v259_v41 = vsel %vm108_vm7, 1.0, %v344_v5 }
  0x13   :  { %v322_v42 = vpack.c.bf16 %v259_v41, %v258_v40  ;;  %v129_v43 = vadd.f32 %v264_v36, %v127_v38  ;;  %v130_v44 = vadd.f32 %v265_v37, %v128_v39 }
  0x15   :  { %338 = vst [vmem:[%s444_s1 + $0x18] sm:$0xff] %v322_v42   ;;  %v131_v45 = vsel %vm107_vm6, %v264_v36, %v129_v43  ;;  %v132_v46 = vsel %vm108_vm7, %v265_v37, %v130_v44 }
  0x16   :  { %vm133_vm8 = vcmp.gt.f32.partialorder %v131_v45, 0.2  ;;  %vm134_vm9 = vcmp.gt.f32.partialorder %v132_v46, 0.2  ;;  %v153_v49 = vmul.f32 0.25, %v131_v45  ;;  %v154_v50 = vmul.f32 0.25, %v132_v46 }
  0x17   :  { %v266_v51 = vsel %vm133_vm8, 1.0, %v344_v5  ;;  %v267_v52 = vsel %vm134_vm9, 1.0, %v344_v5 }
  0x18   :  { %v325_v53 = vpack.c.bf16 %v267_v52, %v266_v51  ;;  %v155_v54 = vadd.f32 %v272_v47, %v153_v49  ;;  %v156_v55 = vadd.f32 %v273_v48, %v154_v50 }
  0x1a   :  { %339 = vst [vmem:[%s444_s1 + $0x20] sm:$0xff] %v325_v53   ;;  %v157_v56 = vsel %vm133_vm8, %v272_v47, %v155_v54  ;;  %v158_v57 = vsel %vm134_vm9, %v273_v48, %v156_v55 }
  0x1b   :  { %vm159_vm10 = vcmp.gt.f32.partialorder %v157_v56, 0.2  ;;  %vm160_vm11 = vcmp.gt.f32.partialorder %v158_v57, 0.2  ;;  %v179_v60 = vmul.f32 0.25, %v157_v56  ;;  %v180_v61 = vmul.f32 0.25, %v158_v57 }
  0x1c   :  { %v274_v62 = vsel %vm159_vm10, 1.0, %v344_v5  ;;  %v275_v63 = vsel %vm160_vm11, 1.0, %v344_v5 }
  0x1d   :  { %v328_v0 = vpack.c.bf16 %v275_v63, %v274_v62  ;;  %v181_v1 = vadd.f32 %v280_v58, %v179_v60  ;;  %v182_v2 = vadd.f32 %v281_v59, %v180_v61 }
  0x1f   :  { %340 = vst [vmem:[%s444_s1 + $0x28] sm:$0xff] %v328_v0   ;;  %v183_v3 = vsel %vm159_vm10, %v280_v58, %v181_v1  ;;  %v184_v4 = vsel %vm160_vm11, %v281_v59, %v182_v2 }
  0x20   :  { %vm185_vm12 = vcmp.gt.f32.partialorder %v183_v3, 0.2  ;;  %vm186_vm13 = vcmp.gt.f32.partialorder %v184_v4, 0.2  ;;  %v205_v8 = vmul.f32 0.25, %v183_v3  ;;  %v206_v9 = vmul.f32 0.25, %v184_v4 }
  0x21   :  { %v282_v10 = vsel %vm185_vm12, 1.0, %v344_v5  ;;  %v283_v11 = vsel %vm186_vm13, 1.0, %v344_v5 }
  0x22   :  { %v331_v12 = vpack.c.bf16 %v283_v11, %v282_v10  ;;  %v207_v13 = vadd.f32 %v288_v6, %v205_v8  ;;  %v208_v14 = vadd.f32 %v289_v7, %v206_v9 }
  0x24   :  { %341 = vst [vmem:[%s444_s1 + $0x30] sm:$0xff] %v331_v12   ;;  %v209_v15 = vsel %vm185_vm12, %v288_v6, %v207_v13  ;;  %v210_v16 = vsel %vm186_vm13, %v289_v7, %v208_v14 }
  0x25   :  { %vm211_vm14 = vcmp.gt.f32.partialorder %v209_v15, 0.2  ;;  %vm212_vm15 = vcmp.gt.f32.partialorder %v210_v16, 0.2 }
  0x26   :  { %v290_v17 = vsel %vm211_vm14, 1.0, %v344_v5  ;;  %v291_v18 = vsel %vm212_vm15, 1.0, %v344_v5 }
  0x27   :  { %v334_v19 = vpack.c.bf16 %v291_v18, %v290_v17 }
  0x29   :  { %342 = vst [vmem:[%s444_s1 + $0x38] sm:$0xff] %v334_v19  }

</bundles_post_ra>
